<compile_context>
chip_gen: v7x
topology: tpu7x:2x2x1
jax: 0.10.0
libtpu: 0.0.40
codegen_flags: <defaults>
</compile_context>

<pallas_src>
import numpy as np
import jax
import jax.numpy as jnp
from jax import lax
from jax.experimental import pallas as pl
from jax.experimental.pallas import tpu as pltpu


def _round_up(n, m):
    return ((n + m - 1) // m) * m


def pack_policy_params(params):
    """Pack all Linear weights/biases into ONE f32 slab (host-side, done once).

    Layout (row-major, 8-aligned layer starts so in-kernel slices stay sublane aligned):
      layer l occupies rows [start_l, start_l + out_l]:
        rows start_l .. start_l+out_l-1 , cols 0..in_l-1  -> W_l  (PyTorch [out, in])
        row  start_l + out_l            , cols 0..out_l-1 -> b_l
    Returns (packed_jnp_array, layout) where layout = ((start, out, in), ...) per layer.
    """
    ws = [np.asarray(params[k], np.float32) for k in ("w0", "w1", "w2")]
    bs = [np.asarray(params[k], np.float32) for k in ("b0", "b1", "b2")]
    cols = max(max(w.shape[1] for w in ws), max(w.shape[0] for w in ws))
    starts, r = [], 0
    for w in ws:
        starts.append(r)
        r = _round_up(r + w.shape[0] + 1, 8)
    buf = np.zeros((r, cols), np.float32)
    for s, w, b in zip(starts, ws, bs):
        o, i = w.shape
        buf[s:s + o, :i] = w
        buf[s + o, :o] = b
    layout = tuple((s, w.shape[0], w.shape[1]) for s, w in zip(starts, ws))
    return jnp.asarray(buf), layout


def _make_kernel(layout):
    """Build the fused 3-layer MLP kernel for a given (static) packed-param layout."""
    (s0, h0, d_in), (s1, h1, _), (s2, a, _) = layout
    dn = (((1,), (1,)), ((), ()))   # contract the "in" dim: activations @ W^T

    def kernel(x_ref, p_ref, o_ref):
        x = x_ref[...]                                    # [tb, D_in] f32
        # Static views into the packed parameter slab (zero-cost slicing).
        w0 = p_ref[s0:s0 + h0, 0:d_in]                    # [H0, D_in]
        b0 = p_ref[s0 + h0:s0 + h0 + 1, 0:h0]             # [1, H0]
        w1 = p_ref[s1:s1 + h1, 0:h0]                      # [H1, H0]
        b1 = p_ref[s1 + h1:s1 + h1 + 1, 0:h1]             # [1, H1]
        w2 = p_ref[s2:s2 + a, 0:h1]                       # [A, H1]
        b2 = p_ref[s2 + a:s2 + a + 1, 0:a]                # [1, A]

        # Layer 0: Linear + ReLU
        z0 = lax.dot_general(x, w0, dn, preferred_element_type=jnp.float32) + b0
        a0 = jnp.maximum(z0, 0.0)                         # [tb, H0]
        # Layer 1: Linear + Tanh
        z1 = lax.dot_general(a0, w1, dn, preferred_element_type=jnp.float32) + b1
        a1 = jnp.tanh(z1)                                 # [tb, H1]
        # Output layer: Linear (raw logits)
        out = lax.dot_general(a1, w2, dn, preferred_element_type=jnp.float32) + b2
        o_ref[...] = out.astype(o_ref.dtype)              # [tb, A]

    return kernel


def policy_model_forward(x, packed, layout, *, num_batch_tiles=1):
    """Fused policy MLP forward.

    x:       [B, D_in] float32 (original PyTorch layout; no transpose / cast / pad)
    packed:  packed param slab from pack_policy_params (built once at init)
    layout:  static layout tuple from pack_policy_params
    num_batch_tiles: 1 for v5e/v6e (single TensorCore); 2 for v7x (dual TC split).
    Returns: logits [B, A] float32
    """
    B, d_in = x.shape
    assert d_in == layout[0][2], "x feature dim mismatch with packed params"
    n_actions = layout[2][1]

    nt = int(num_batch_tiles)
    # Only split when it divides evenly into sublane-aligned tiles; otherwise one
    # resident block (block == full array, so no (8,128) constraint and no padding).
    if nt < 1 or B % nt != 0 or (nt > 1 and (B // nt) % 8 != 0):
        nt = 1
    tb = B // nt

    rows, cols = packed.shape
    kernel = _make_kernel(layout)

    return pl.pallas_call(
        kernel,
        out_shape=jax.ShapeDtypeStruct((B, n_actions), jnp.float32),
        grid=(nt,),
        in_specs=[
            pl.BlockSpec((tb, d_in), lambda i: (i, 0)),     # batch tile of x (f32, untouched)
            pl.BlockSpec((rows, cols), lambda i: (0, 0)),   # packed params, resident
        ],
        out_specs=pl.BlockSpec((tb, n_actions), lambda i: (i, 0)),
        compiler_params=pltpu.CompilerParams(
            dimension_semantics=("parallel",),   # batch tiles shard across TCs on v7x
        ),
    )(x, packed)


def init_params(key, d_in, hidden, n_actions):
    """Deterministic synthetic init, PyTorch nn.Linear layout (weight = [out, in])."""
    h0, h1 = hidden
    k0, k1, k2, k3, k4, k5 = jax.random.split(key, 6)
    return {
        "w0": jax.random.normal(k0, (h0, d_in), jnp.float32) * np.sqrt(2.0 / d_in),
        "b0": (jax.random.uniform(k1, (h0,), jnp.float32) - 0.5) * 0.1,
        "w1": jax.random.normal(k2, (h1, h0), jnp.float32) * np.sqrt(2.0 / h0),
        "b1": (jax.random.uniform(k3, (h1,), jnp.float32) - 0.5) * 0.1,
        "w2": jax.random.normal(k4, (n_actions, h1), jnp.float32) * np.sqrt(2.0 / h1),
        "b2": (jax.random.uniform(k5, (n_actions,), jnp.float32) - 0.5) * 0.1,
    }


def reference_forward(x, p):
    """Pure-f32 JAX reference mirroring the PyTorch forward pass."""
    h0 = jnp.maximum(jnp.dot(x, p["w0"].T) + p["b0"][None, :], 0.0)
    h1 = jnp.tanh(jnp.dot(h0, p["w1"].T) + p["b1"][None, :])
    return jnp.dot(h1, p["w2"].T) + p["b2"][None, :]


if __name__ == "__main__":
    # Synthetic "env": observation_space.shape = (8,) -> D_in = 8; action_space.n = 4
    # dense_layers = [(32, 'relu', 'default'), (32, 'tanh', 'default')]
    # TODO(synk): optimizer / weight-init-config / save-load machinery of PolicyModel is
    # host-side bookkeeping with no kernel equivalent; only forward() is implemented.
    B, D_IN, HIDDEN, N_ACTIONS = 256, 8, (32, 32), 4

    key = jax.random.PRNGKey(0)
    kx, kp = jax.random.split(key)
    x = jax.random.normal(kx, (B, D_IN), jnp.float32)
    params = init_params(kp, D_IN, HIDDEN, N_ACTIONS)

    # One-time param packing (outside the hot path).
    packed, layout = pack_policy_params(params)

    ref = reference_forward(x, params)

    # Default: single grid step (best on v5e / v6e — one TensorCore, minimal stepping).
    logits = jax.block_until_ready(policy_model_forward(x, packed, layout))
    np.testing.assert_allclose(np.asarray(logits), np.asarray(ref), rtol=2e-2, atol=2e-2)

    # v7x path: two parallel batch tiles, one per TensorCore.
    logits2 = jax.block_until_ready(
        policy_model_forward(x, packed, layout, num_batch_tiles=2))
    np.testing.assert_allclose(np.asarray(logits2), np.asarray(ref), rtol=2e-2, atol=2e-2)

    print("KERNEL_OK")
</pallas_src>

<mosaic_0001>
module attributes {stable_mosaic.version = 11 : i64} {
  func.func @kernel(%arg0: i32, %arg1: memref<256x8xf32, #tpu.memory_space<vmem>>, %arg2: memref<88x32xf32, #tpu.memory_space<vmem>>, %arg3: memref<256x4xf32, #tpu.memory_space<vmem>>) attributes {dimension_semantics = [#tpu.dimension_semantics<parallel>], iteration_bounds = array<i64: 1>, scalar_prefetch = 0 : i64, scratch_operands = 0 : i64, tpu.core_type = #tpu.core_type<tc>, window_params = [{transform_indices = @transform_0, window_bounds = array<i64: 256, 8>}, {pipeline_mode = #tpu.pipeline_mode<synchronous>, transform_indices = @transform_1, window_bounds = array<i64: 88, 32>}, {transform_indices = @transform_2, window_bounds = array<i64: 256, 4>}]} {
    %c0 = arith.constant 0 : index
    %c0_0 = arith.constant 0 : index
    %0 = vector.load %arg1[%c0, %c0_0] : memref<256x8xf32, #tpu.memory_space<vmem>>, vector<256x8xf32>
    %c0_1 = arith.constant 0 : index
    %c0_2 = arith.constant 0 : index
    %1 = vector.load %arg2[%c0_1, %c0_2] : memref<88x32xf32, #tpu.memory_space<vmem>>, vector<32x8xf32>
    %c32 = arith.constant 32 : index
    %c0_3 = arith.constant 0 : index
    %2 = vector.load %arg2[%c32, %c0_3] : memref<88x32xf32, #tpu.memory_space<vmem>>, vector<1x32xf32>
    %c40 = arith.constant 40 : index
    %c0_4 = arith.constant 0 : index
    %3 = vector.load %arg2[%c40, %c0_4] : memref<88x32xf32, #tpu.memory_space<vmem>>, vector<32x32xf32>
    %c72 = arith.constant 72 : index
    %c0_5 = arith.constant 0 : index
    %4 = vector.load %arg2[%c72, %c0_5] : memref<88x32xf32, #tpu.memory_space<vmem>>, vector<1x32xf32>
    %c80 = arith.constant 80 : index
    %c0_6 = arith.constant 0 : index
    %5 = vector.load %arg2[%c80, %c0_6] : memref<88x32xf32, #tpu.memory_space<vmem>>, vector<4x32xf32>
    %c84 = arith.constant 84 : index
    %c0_7 = arith.constant 0 : index
    %6 = vector.load %arg2[%c84, %c0_7] : memref<88x32xf32, #tpu.memory_space<vmem>>, vector<1x4xf32>
    %cst = arith.constant dense<0.000000e+00> : vector<256x32xf32>
    %7 = tpu.matmul %0, %1, %cst {dimension_numbers = #tpu.dot_dimension_numbers<[1], [1], [0], [0], [0, 0, 1, 0], [], []>} : vector<256x8xf32>, vector<32x8xf32>, vector<256x32xf32> -> vector<256x32xf32>
    %8 = vector.broadcast %2 : vector<1x32xf32> to vector<256x32xf32>
    %9 = arith.addf %7, %8 : vector<256x32xf32>
    %cst_8 = arith.constant 0.000000e+00 : f32
    %10 = vector.broadcast %cst_8 : f32 to vector<256x32xf32>
    %11 = arith.maximumf %9, %10 : vector<256x32xf32>
    %cst_9 = arith.constant dense<0.000000e+00> : vector<256x32xf32>
    %12 = tpu.matmul %11, %3, %cst_9 {dimension_numbers = #tpu.dot_dimension_numbers<[1], [1], [0], [0], [0, 0, 1, 0], [], []>} : vector<256x32xf32>, vector<32x32xf32>, vector<256x32xf32> -> vector<256x32xf32>
    %13 = vector.broadcast %4 : vector<1x32xf32> to vector<256x32xf32>
    %14 = arith.addf %12, %13 : vector<256x32xf32>
    %15 = math.tanh %14 : vector<256x32xf32>
    %cst_10 = arith.constant dense<0.000000e+00> : vector<256x4xf32>
    %16 = tpu.matmul %15, %5, %cst_10 {dimension_numbers = #tpu.dot_dimension_numbers<[1], [1], [0], [0], [0, 0, 1, 0], [], []>} : vector<256x32xf32>, vector<4x32xf32>, vector<256x4xf32> -> vector<256x4xf32>
    %17 = vector.broadcast %6 : vector<1x4xf32> to vector<256x4xf32>
    %18 = arith.addf %16, %17 : vector<256x4xf32>
    %c0_11 = arith.constant 0 : index
    %c0_12 = arith.constant 0 : index
    %19 = vector.load %arg3[%c0_11, %c0_12] : memref<256x4xf32, #tpu.memory_space<vmem>>, vector<256x4xf32>
    tpu.vector_store %arg3[%c0_11, %c0_12], %18 {strides = array<i32>} : memref<256x4xf32, #tpu.memory_space<vmem>>, vector<256x4xf32>,
    return
  }
  func.func @transform_0(%arg0: i32) -> (i32, i32) {
    %c0_i32 = arith.constant 0 : i32
    %c0_i32_0 = arith.constant 0 : i32
    return %arg0, %c0_i32 : i32, i32
  }
  func.func @transform_1(%arg0: i32) -> (i32, i32) {
    %c0_i32 = arith.constant 0 : i32
    %c0_i32_0 = arith.constant 0 : i32
    %c0_i32_1 = arith.constant 0 : i32
    return %c0_i32, %c0_i32_0 : i32, i32
  }
  func.func @transform_2(%arg0: i32) -> (i32, i32) {
    %c0_i32 = arith.constant 0 : i32
    %c0_i32_0 = arith.constant 0 : i32
    return %arg0, %c0_i32 : i32, i32
  }
}

</mosaic_0001>

<bundles_post_ra>
// kernel: tpu_custom_call.1
= control target key start
LH: loop header
LB: loop body
LE: loop exit
PB: predicated region body
PF: predicated region fallthrough
CT: control target
= control target key end

     0   :  { %vm59_vm0 = vcmask 64512   ;;  %vm429_vm2 = vcmask 261120   ;;  %vm1123_vm4 = vcmask 31744   ;;  %s2159_s1 = inlined_call_operand.vmem [shape: f32[88,32], index: 1, kind: input, shape index: {}]   ;;  %s2160_s0 = inlined_call_operand.vmem [shape: f32[256,8], index: 0, kind: input, shape index: {}]   ;;  %s2161_s2 = inlined_call_operand.vmem [shape: f32[256,4], index: 2, kind: output, shape index: {}]  }
   0x1   :  { %v43_v0 = vld [vmem:[%s2159_s1] sm:$0xff]  ;;  %v44_v1 = vld [vmem:[%s2159_s1 + $0x8] sm:$0xff]  ;;  %vm1650_vm1 = vmpackc.low %vm59_vm0, %vm59_vm0 }
   0x2   :  { %v1535_v3 = vpack.c.bf16 %v44_v1, %v43_v0  ;;  %v45_v4 = vld [vmem:[%s2159_s1 + $0x10] sm:$0xff]  ;;  %v46_v5 = vld [vmem:[%s2159_s1 + $0x18] sm:$0xff]  ;;  %v11_v6 = vld [vmem:[%s2160_s0] sm:$0xff] }
   0x3   :  { %v1541_v7 = vpack.c.bf16 %v46_v5, %v45_v4  ;;  %1381 = vmatprep.mubr.msk.f32.mxu0 %vm59_vm0, %v11_v6  ;;  %v27_v8 = vld [vmem:[%s2160_s0 + $0x80] sm:$0xff]  ;;  %v48_v9 = vld [vmem:[%s2159_s1 + $0x28] sm:$0xff]  ;;  %v49_v10 = vld [vmem:[%s2159_s1 + $0x30] sm:$0xff] }
   0x4   :  { %1537 = vmatprep.subr.msk.bf16.mxu0 %vm1650_vm1, %v1535_v3  ;;  %1559 = vmatprep.subr.msk.bf16.mxu1 %vm1650_vm1, %v1535_v3  ;;  %v1547_v11 = vpack.c.bf16 %v49_v10, %v48_v9  ;;  %vm1692_vm3 = vmpackc.low %vm429_vm2, %vm429_vm2  ;;  %v50_v13 = vld [vmem:[%s2159_s1 + $0x38] sm:$0xff]  ;;  %v51_v14 = vld [vmem:[%s2159_s1 + $0x40] sm:$0xff] }
   0x5   :  { %1540 = vmatpush3.bf16.xpose.msk.msra.mxu0 %vm1650_vm1, %v1535_v3  ;;  %1561 = vmatpush3.bf16.xpose.msk.msra.mxu1 %vm1650_vm1, %v1535_v3  ;;  %v12_v15 = vld [vmem:[%s2160_s0 + $0x8] sm:$0xff]  ;;  %v13_v16 = vld [vmem:[%s2160_s0 + $0x10] sm:$0xff]  ;;  %v1553_v19 = vpack.c.bf16 %v51_v14, %v50_v13  ;;  %v14_v20 = vld [vmem:[%s2160_s0 + $0x18] sm:$0xff] }
   0x6   :  { %1543 = vmatprep.subr.msk.bf16.mxu0 %vm1650_vm1, %v1541_v7  ;;  %1560 = vmatprep.subr.msk.bf16.mxu1 %vm1650_vm1, %v1541_v7  ;;  %v28_v17 = vld [vmem:[%s2160_s0 + $0x88] sm:$0xff]  ;;  %v29_v18 = vld [vmem:[%s2160_s0 + $0x90] sm:$0xff]  ;;  %v15_v21 = vld [vmem:[%s2160_s0 + $0x20] sm:$0xff] }
   0x7   :  { %1405 = vmatprep.mubr.msk.f32.mxu1 %vm59_vm0, %v27_v8  ;;  %v30_v22 = vld [vmem:[%s2160_s0 + $0x98] sm:$0xff]  ;;  %v31_v23 = vld [vmem:[%s2160_s0 + $0xa0] sm:$0xff]  ;;  %v16_v24 = vld [vmem:[%s2160_s0 + $0x28] sm:$0xff] }
   0x8   :  { %v17_v25 = vld [vmem:[%s2160_s0 + $0x30] sm:$0xff]  ;;  %v32_v26 = vld [vmem:[%s2160_s0 + $0xa8] sm:$0xff]  ;;  %v18_v28 = vld [vmem:[%s2160_s0 + $0x38] sm:$0xff] }
   0x9   :  { %v33_v27 = vld [vmem:[%s2160_s0 + $0xb0] sm:$0xff]  ;;  %v19_v29 = vld [vmem:[%s2160_s0 + $0x40] sm:$0xff]  ;;  %v34_v30 = vld [vmem:[%s2160_s0 + $0xb8] sm:$0xff] }
   0xa   :  { %v35_v31 = vld [vmem:[%s2160_s0 + $0xc0] sm:$0xff]  ;;  %v20_v32 = vld [vmem:[%s2160_s0 + $0x48] sm:$0xff]  ;;  %v21_v33 = vld [vmem:[%s2160_s0 + $0x50] sm:$0xff] }
   0xb   :  { %v36_v34 = vld [vmem:[%s2160_s0 + $0xc8] sm:$0xff]  ;;  %v37_v35 = vld [vmem:[%s2160_s0 + $0xd0] sm:$0xff]  ;;  %v22_v36 = vld [vmem:[%s2160_s0 + $0x58] sm:$0xff] }
   0xc   :  { %v23_v37 = vld [vmem:[%s2160_s0 + $0x60] sm:$0xff]  ;;  %v38_v38 = vld [vmem:[%s2160_s0 + $0xd8] sm:$0xff]  ;;  %v24_v40 = vld [vmem:[%s2160_s0 + $0x68] sm:$0xff] }
   0xd   :  { %1546 = vmatpush3.bf16.xpose.msk.msra.mxu0 %vm1650_vm1, %v1541_v7  ;;  %1562 = vmatpush3.bf16.xpose.msk.msra.mxu1 %vm1650_vm1, %v1541_v7  ;;  %v39_v39 = vld [vmem:[%s2160_s0 + $0xe0] sm:$0xff]  ;;  %v25_v41 = vld [vmem:[%s2160_s0 + $0x70] sm:$0xff]  ;;  %v40_v42 = vld [vmem:[%s2160_s0 + $0xe8] sm:$0xff] }
   0xe   :  { %1549 = vmatprep.subr.msk.bf16.mxu1 %vm1692_vm3, %v1547_v11  ;;  %v41_v43 = vld [vmem:[%s2160_s0 + $0xf0] sm:$0xff]  ;;  %v26_v44 = vld [vmem:[%s2160_s0 + $0x78] sm:$0xff]  ;;  %v1838_v47 = vld [vmem:[%s2159_s1 + $0x20] ss:$0 sm:$0xff] }
   0xf   :  { %v42_v45 = vld [vmem:[%s2160_s0 + $0xf8] sm:$0xff]  ;;  %v53_v46 = vld [vmem:[%s2159_s1 + $0x50] sm:$0xf] }
  0x10   :  { %1485 = vmatprep.subr.msk.mxu0 %vm429_vm2, %v53_v46 }
  0x14   :  { %1382 = vmatmul.mubr.msk.f32.vlgmr.msra.gmra.mrb[0].mxu0 %vm59_vm0, %v12_v15  ;;  %1406 = vmatmul.mubr.msk.f32.vlgmr.msra.gmra.mrb[0].mxu1 %vm59_vm0, %v28_v17 }
  0x15   :  { %1384 = vmatprep.mubr.msk.f32.mxu0 %vm59_vm0, %v13_v16  ;;  %1408 = vmatprep.mubr.msk.f32.mxu1 %vm59_vm0, %v29_v18 }
  0x16   :  { %1552 = vmatpush3.bf16.xpose.msk.msra.mxu1 %vm1692_vm3, %v1547_v11  ;;  %1486 = vmatpush3.xpose.msk.msra.mxu0 %vm429_vm2, %v53_v46 }
  0x17   :  { %1555 = vmatprep.subr.msk.bf16.mxu1 %vm1692_vm3, %v1553_v19 }
  0x18   :  { %1385 = vmatmul.mubr.msk.f32.gmra.mrb[2].mxu0 %vm59_vm0, %v14_v20  ;;  %1409 = vmatmul.mubr.msk.f32.gmra.mrb[2].mxu1 %vm59_vm0, %v30_v22 }
  0x19   :  { %1387 = vmatprep.mubr.msk.f32.mxu0 %vm59_vm0, %v15_v21  ;;  %1411 = vmatprep.mubr.msk.f32.mxu1 %vm59_vm0, %v31_v23 }
  0x1c   :  { %1388 = vmatmul.mubr.msk.f32.gmra.mrb[4].mxu0 %vm59_vm0, %v16_v24  ;;  %1412 = vmatmul.mubr.msk.f32.gmra.mrb[4].mxu1 %vm59_vm0, %v32_v26 }
  0x1d   :  { %1390 = vmatprep.mubr.msk.f32.mxu0 %vm59_vm0, %v17_v25  ;;  %1414 = vmatprep.mubr.msk.f32.mxu1 %vm59_vm0, %v33_v27 }
  0x1e   :  { %1558 = vmatpush3.bf16.xpose.msk.msra.mxu1 %vm1692_vm3, %v1553_v19 }
  0x20   :  { %1391 = vmatmul.mubr.msk.f32.gmra.mrb[6].mxu0 %vm59_vm0, %v18_v28  ;;  %1415 = vmatmul.mubr.msk.f32.gmra.mrb[6].mxu1 %vm59_vm0, %v34_v30 }
  0x21   :  { %1393 = vmatprep.mubr.msk.f32.mxu0 %vm59_vm0, %v19_v29  ;;  %1417 = vmatprep.mubr.msk.f32.mxu1 %vm59_vm0, %v35_v31 }
  0x24   :  { %1394 = vmatmul.mubr.msk.f32.gmra.mrb[8].mxu0 %vm59_vm0, %v20_v32  ;;  %1418 = vmatmul.mubr.msk.f32.gmra.mrb[8].mxu1 %vm59_vm0, %v36_v34 }
  0x25   :  { %1396 = vmatprep.mubr.msk.f32.mxu0 %vm59_vm0, %v21_v33  ;;  %1420 = vmatprep.mubr.msk.f32.mxu1 %vm59_vm0, %v37_v35 }
  0x28   :  { %1397 = vmatmul.mubr.msk.f32.gmra.mrb[10].mxu0 %vm59_vm0, %v22_v36  ;;  %1421 = vmatmul.mubr.msk.f32.gmra.mrb[10].mxu1 %vm59_vm0, %v38_v38 }
  0x29   :  { %1399 = vmatprep.mubr.msk.f32.mxu0 %vm59_vm0, %v23_v37  ;;  %1423 = vmatprep.mubr.msk.f32.mxu1 %vm59_vm0, %v39_v39 }
  0x2c   :  { %1400 = vmatmul.mubr.msk.f32.gmra.mrb[12].mxu0 %vm59_vm0, %v24_v40  ;;  %1424 = vmatmul.mubr.msk.f32.gmra.mrb[12].mxu1 %vm59_vm0, %v40_v42 }
  0x2d   :  { %1402 = vmatprep.mubr.msk.f32.mxu0 %vm59_vm0, %v25_v41  ;;  %1426 = vmatprep.mubr.msk.f32.mxu1 %vm59_vm0, %v41_v43 }
  0x30   :  { %1403 = vmatmul.mubr.msk.f32.gmra.mrb[14].mxu0 %vm59_vm0, %v26_v44  ;;  %1427 = vmatmul.mubr.msk.f32.gmra.mrb[14].mxu1 %vm59_vm0, %v42_v45 }
  0xe7   :  { %v1383_v48 = vpop.f32.mrb[0].mxu0  ;;  %v1841_v51 = vpop.f32.mrb[0].mxu1 }
  0xe8   :  { %v240_v49 = vadd.f32 %v1383_v48, %v1838_v47  ;;  %v234_v50 = vpop.f32.mrb[1].mxu0  ;;  %v1844_v53 = vpop.f32.mrb[1].mxu1 }
  0xe9   :  { %v235_v52 = vadd.f32 %v1838_v47, %v234_v50  ;;  %v315_v40 = vadd.f32 %v1838_v47, %v1844_v53  ;;  %v320_v53 = vadd.f32 %v1841_v51, %v1838_v47 }
  0xea   :  { %v394_v56 = vmax.f32 %v240_v49, 0.0 }
  0xeb   :  { %v393_v54 = vmax.f32 %v235_v52, 0.0  ;;  %v1386_v55 = vpop.f32.mrb[2].mxu0  ;;  %v1847_v59 = vpop.f32.mrb[2].mxu1  ;;  %v409_v49 = vmax.f32 %v315_v40, 0.0 }
  0xec   :  { %v250_v57 = vadd.f32 %v1386_v55, %v1838_v47  ;;  %v244_v58 = vpop.f32.mrb[3].mxu0  ;;  %v1851_v61 = vpop.f32.mrb[3].mxu1 }
  0xed   :  { %v245_v60 = vadd.f32 %v1838_v47, %v244_v58  ;;  %1437 = vmatprep.mubr.msk.f32.mxu1 %vm429_vm2, %v393_v54  ;;  %v325_v50 = vadd.f32 %v1838_v47, %v1851_v61 }
  0xee   :  { %1438 = vmatmul.mubr.msk.f32.vlgmr.msra.gmra.mrb[16].mxu1 %vm429_vm2, %v394_v56  ;;  %v396_v0 = vmax.f32 %v250_v57, 0.0  ;;  %v410_v56 = vmax.f32 %v320_v53, 0.0  ;;  %v330_v57 = vadd.f32 %v1847_v59, %v1838_v47 }
  0xef   :  { %v395_v62 = vmax.f32 %v245_v60, 0.0  ;;  %v1389_v63 = vpop.f32.mrb[4].mxu0  ;;  %v1855_v3 = vpop.f32.mrb[4].mxu1  ;;  %v411_v54 = vmax.f32 %v325_v50, 0.0 }
  0xf0   :  { %v260_v1 = vadd.f32 %v1389_v63, %v1838_v47  ;;  %v254_v2 = vpop.f32.mrb[5].mxu0  ;;  %v334_v5 = vpop.f32.mrb[5].mxu1  ;;  %v412_v60 = vmax.f32 %v330_v57, 0.0  ;;  %v340_v61 = vadd.f32 %v1855_v3, %v1838_v47 }
  0xf1   :  { %v255_v4 = vadd.f32 %v1838_v47, %v254_v2  ;;  %1440 = vmatprep.mubr.msk.f32.mxu1 %vm429_vm2, %v395_v62  ;;  %v335_v55 = vadd.f32 %v1838_v47, %v334_v5 }
  0xf2   :  { %1441 = vmatmul.mubr.msk.f32.gmra.mrb[18].mxu1 %vm429_vm2, %v396_v0  ;;  %v398_v8 = vmax.f32 %v260_v1, 0.0  ;;  %v414_v0 = vmax.f32 %v340_v61, 0.0 }
  0xf3   :  { %v397_v6 = vmax.f32 %v255_v4, 0.0  ;;  %v1392_v7 = vpop.f32.mrb[6].mxu0  ;;  %v1861_v11 = vpop.f32.mrb[6].mxu1  ;;  %v413_v58 = vmax.f32 %v335_v55, 0.0 }
  0xf4   :  { %v270_v9 = vadd.f32 %v1392_v7, %v1838_v47  ;;  %v264_v10 = vpop.f32.mrb[7].mxu0  ;;  %v344_v13 = vpop.f32.mrb[7].mxu1  ;;  %v350_v59 = vadd.f32 %v1861_v11, %v1838_v47 }
  0xf5   :  { %v265_v12 = vadd.f32 %v1838_v47, %v264_v10  ;;  %1443 = vmatprep.mubr.msk.f32.mxu1 %vm429_vm2, %v397_v6  ;;  %v345_v51 = vadd.f32 %v1838_v47, %v344_v13 }
  0xf6   :  { %1444 = vmatmul.mubr.msk.f32.gmra.mrb[20].mxu1 %vm429_vm2, %v398_v8  ;;  %v400_v16 = vmax.f32 %v270_v9, 0.0  ;;  %v416_v4 = vmax.f32 %v350_v59, 0.0 }
  0xf7   :  { %v399_v14 = vmax.f32 %v265_v12, 0.0  ;;  %v1395_v15 = vpop.f32.mrb[8].mxu0  ;;  %v1867_v19 = vpop.f32.mrb[8].mxu1  ;;  %v415_v62 = vmax.f32 %v345_v51, 0.0 }
  0xf8   :  { %v280_v17 = vadd.f32 %v1395_v15, %v1838_v47  ;;  %v274_v18 = vpop.f32.mrb[9].mxu0  ;;  %v354_v21 = vpop.f32.mrb[9].mxu1  ;;  %v360_v3 = vadd.f32 %v1867_v19, %v1838_v47 }
  0xf9   :  { %v275_v20 = vadd.f32 %v1838_v47, %v274_v18  ;;  %1446 = vmatprep.mubr.msk.f32.mxu1 %vm429_vm2, %v399_v14  ;;  %v355_v63 = vadd.f32 %v1838_v47, %v354_v21 }
  0xfa   :  { %1447 = vmatmul.mubr.msk.f32.gmra.mrb[22].mxu1 %vm429_vm2, %v400_v16  ;;  %v402_v24 = vmax.f32 %v280_v17, 0.0  ;;  %v418_v7 = vmax.f32 %v360_v3, 0.0  ;;  %v1928_v17 = vld [vmem:[%s2159_s1 + $0x48] ss:$0 sm:$0xff] }
  0xfb   :  { %v401_v22 = vmax.f32 %v275_v20, 0.0  ;;  %v1398_v23 = vpop.f32.mrb[10].mxu0  ;;  %v1422_v27 = vpop.f32.mrb[10].mxu1  ;;  %v417_v1 = vmax.f32 %v355_v63, 0.0 }
  0xfc   :  { %v290_v25 = vadd.f32 %v1398_v23, %v1838_v47  ;;  %v284_v26 = vpop.f32.mrb[11].mxu0  ;;  %v364_v29 = vpop.f32.mrb[11].mxu1  ;;  %v370_v8 = vadd.f32 %v1422_v27, %v1838_v47 }
  0xfd   :  { %v285_v28 = vadd.f32 %v1838_v47, %v284_v26  ;;  %1449 = vmatprep.mubr.msk.f32.mxu1 %vm429_vm2, %v401_v22  ;;  %v365_v2 = vadd.f32 %v1838_v47, %v364_v29 }
  0xfe   :  { %1450 = vmatmul.mubr.msk.f32.gmra.mrb[24].mxu1 %vm429_vm2, %v402_v24  ;;  %v404_v32 = vmax.f32 %v290_v25, 0.0  ;;  %v420_v11 = vmax.f32 %v370_v8, 0.0 }
  0xff   :  { %v403_v30 = vmax.f32 %v285_v28, 0.0  ;;  %v1401_v31 = vpop.f32.mrb[12].mxu0  ;;  %v1425_v35 = vpop.f32.mrb[12].mxu1  ;;  %v419_v5 = vmax.f32 %v365_v2, 0.0 }
 0x100   :  { %v300_v33 = vadd.f32 %v1401_v31, %v1838_v47  ;;  %v294_v34 = vpop.f32.mrb[13].mxu0  ;;  %v374_v37 = vpop.f32.mrb[13].mxu1  ;;  %v380_v12 = vadd.f32 %v1425_v35, %v1838_v47 }
 0x101   :  { %v295_v36 = vadd.f32 %v1838_v47, %v294_v34  ;;  %1452 = vmatprep.mubr.msk.f32.mxu1 %vm429_vm2, %v403_v30  ;;  %v375_v6 = vadd.f32 %v1838_v47, %v374_v37 }
 0x102   :  { %1453 = vmatmul.mubr.msk.f32.gmra.mrb[26].mxu1 %vm429_vm2, %v404_v32  ;;  %v406_v41 = vmax.f32 %v300_v33, 0.0  ;;  %v422_v14 = vmax.f32 %v380_v12, 0.0 }
 0x103   :  { %v405_v38 = vmax.f32 %v295_v36, 0.0  ;;  %v1404_v39 = vpop.f32.mrb[14].mxu0  ;;  %v1428_v44 = vpop.f32.mrb[14].mxu1  ;;  %v421_v9 = vmax.f32 %v375_v6, 0.0 }
 0x104   :  { %v310_v42 = vadd.f32 %v1404_v39, %v1838_v47  ;;  %v304_v43 = vpop.f32.mrb[15].mxu0  ;;  %v384_v46 = vpop.f32.mrb[15].mxu1  ;;  %v390_v15 = vadd.f32 %v1428_v44, %v1838_v47 }
 0x105   :  { %v305_v45 = vadd.f32 %v1838_v47, %v304_v43  ;;  %1455 = vmatprep.mubr.msk.f32.mxu1 %vm429_vm2, %v405_v38  ;;  %v385_v10 = vadd.f32 %v1838_v47, %v384_v46 }
 0x106   :  { %1456 = vmatmul.mubr.msk.f32.gmra.mrb[28].mxu1 %vm429_vm2, %v406_v41  ;;  %v408_v52 = vmax.f32 %v310_v42, 0.0  ;;  %v424_v16 = vmax.f32 %v390_v15, 0.0 }
 0x107   :  { %v407_v48 = vmax.f32 %v305_v45, 0.0  ;;  %v423_v13 = vmax.f32 %v385_v10, 0.0 }
 0x109   :  { %1458 = vmatprep.mubr.msk.f32.mxu1 %vm429_vm2, %v407_v48 }
 0x10a   :  { %1459 = vmatmul.mubr.msk.f32.gmra.mrb[30].mxu1 %vm429_vm2, %v408_v52 }
 0x10b   :  { %1461 = vmatprep.mubr.msk.f32.mxu1 %vm429_vm2, %v409_v49 }
 0x10e   :  { %1462 = vmatmul.mubr.msk.f32.gmra.mrb[32].mxu1 %vm429_vm2, %v410_v56 }
 0x10f   :  { %1464 = vmatprep.mubr.msk.f32.mxu1 %vm429_vm2, %v411_v54 }
 0x112   :  { %1465 = vmatmul.mubr.msk.f32.gmra.mrb[34].mxu1 %vm429_vm2, %v412_v60 }
 0x113   :  { %1467 = vmatprep.mubr.msk.f32.mxu1 %vm429_vm2, %v413_v58 }
 0x116   :  { %1468 = vmatmul.mubr.msk.f32.gmra.mrb[36].mxu1 %vm429_vm2, %v414_v0 }
 0x117   :  { %1470 = vmatprep.mubr.msk.f32.mxu1 %vm429_vm2, %v415_v62 }
 0x11a   :  { %1471 = vmatmul.mubr.msk.f32.gmra.mrb[38].mxu1 %vm429_vm2, %v416_v4 }
 0x11b   :  { %1473 = vmatprep.mubr.msk.f32.mxu1 %vm429_vm2, %v417_v1 }
 0x11e   :  { %1474 = vmatmul.mubr.msk.f32.gmra.mrb[40].mxu1 %vm429_vm2, %v418_v7 }
 0x11f   :  { %1476 = vmatprep.mubr.msk.f32.mxu1 %vm429_vm2, %v419_v5 }
 0x122   :  { %1477 = vmatmul.mubr.msk.f32.gmra.mrb[42].mxu1 %vm429_vm2, %v420_v11 }
 0x123   :  { %1479 = vmatprep.mubr.msk.f32.mxu1 %vm429_vm2, %v421_v9 }
 0x126   :  { %1480 = vmatmul.mubr.msk.f32.gmra.mrb[44].mxu1 %vm429_vm2, %v422_v14 }
 0x127   :  { %1482 = vmatprep.mubr.msk.f32.mxu1 %vm429_vm2, %v423_v13 }
 0x12a   :  { %1483 = vmatmul.mubr.msk.f32.gmra.mrb[46].mxu1 %vm429_vm2, %v424_v16 }
 0x1c1   :  { %v1439_v18 = vpop.f32.mrb[16].mxu1 }
 0x1c2   :  { %v610_v19 = vadd.f32 %v1439_v18, %v1928_v17  ;;  %v604_v20 = vpop.f32.mrb[17].mxu1 }
 0x1c3   :  { %v605_v21 = vadd.f32 %v1928_v17, %v604_v20 }
 0x1c5   :  { %1563 = vtanh.f32 %v605_v21  ;;  %v1442_v47 = vpop.f32.mrb[18].mxu1 }
 0x1c6   :  { %1565 = vtanh.f32 %v610_v19  ;;  %v620_v22 = vadd.f32 %v1442_v47, %v1928_v17  ;;  %v614_v23 = vpop.f32.mrb[19].mxu1 }
 0x1c7   :  { %v615_v24 = vadd.f32 %v1928_v17, %v614_v23 }
 0x1c9   :  { %1567 = vtanh.f32 %v615_v24  ;;  %v1445_v25 = vpop.f32.mrb[20].mxu1 }
 0x1ca   :  { %1569 = vtanh.f32 %v620_v22  ;;  %v630_v26 = vadd.f32 %v1445_v25, %v1928_v17  ;;  %v624_v27 = vpop.f32.mrb[21].mxu1 }
 0x1cb   :  { %v625_v28 = vadd.f32 %v1928_v17, %v624_v27 }
 0x1cd   :  { %1571 = vtanh.f32 %v625_v28  ;;  %v1448_v29 = vpop.f32.mrb[22].mxu1 }
 0x1ce   :  { %1573 = vtanh.f32 %v630_v26  ;;  %v640_v30 = vadd.f32 %v1448_v29, %v1928_v17  ;;  %v634_v31 = vpop.f32.mrb[23].mxu1 }
 0x1cf   :  { %v1564_v32 = vpop.eup %1563  ;;  %v635_v33 = vadd.f32 %v1928_v17, %v634_v31 }
 0x1d0   :  { %v1566_v34 = vpop.eup %1565  ;;  %1487 = vmatprep.mubr.msk.f32.mxu0 %vm429_vm2, %v1564_v32 }
 0x1d1   :  { %1575 = vtanh.f32 %v635_v33  ;;  %v1451_v35 = vpop.f32.mrb[24].mxu1  ;;  %1488 = vmatmul.mubr.msk.f32.vlgmr.msra.gmra.mrb[16].mxu0 %vm429_vm2, %v1566_v34 }
 0x1d2   :  { %1577 = vtanh.f32 %v640_v30  ;;  %v650_v36 = vadd.f32 %v1451_v35, %v1928_v17  ;;  %v644_v37 = vpop.f32.mrb[25].mxu1 }
 0x1d3   :  { %v1568_v38 = vpop.eup %1567  ;;  %v645_v39 = vadd.f32 %v1928_v17, %v644_v37 }
 0x1d4   :  { %v1570_v40 = vpop.eup %1569  ;;  %1490 = vmatprep.mubr.msk.f32.mxu0 %vm429_vm2, %v1568_v38 }
 0x1d5   :  { %1579 = vtanh.f32 %v645_v39  ;;  %v1454_v41 = vpop.f32.mrb[26].mxu1  ;;  %1491 = vmatmul.mubr.msk.f32.gmra.mrb[18].mxu0 %vm429_vm2, %v1570_v40 }
 0x1d6   :  { %1581 = vtanh.f32 %v650_v36  ;;  %v660_v42 = vadd.f32 %v1454_v41, %v1928_v17  ;;  %v654_v43 = vpop.f32.mrb[27].mxu1 }
 0x1d7   :  { %v1572_v44 = vpop.eup %1571  ;;  %v655_v45 = vadd.f32 %v1928_v17, %v654_v43 }
 0x1d8   :  { %v1574_v46 = vpop.eup %1573  ;;  %1493 = vmatprep.mubr.msk.f32.mxu0 %vm429_vm2, %v1572_v44 }
 0x1d9   :  { %1583 = vtanh.f32 %v655_v45  ;;  %v1457_v48 = vpop.f32.mrb[28].mxu1  ;;  %1494 = vmatmul.mubr.msk.f32.gmra.mrb[20].mxu0 %vm429_vm2, %v1574_v46 }
 0x1da   :  { %1585 = vtanh.f32 %v660_v42  ;;  %v670_v49 = vadd.f32 %v1457_v48, %v1928_v17  ;;  %v664_v50 = vpop.f32.mrb[29].mxu1 }
 0x1db   :  { %v1576_v52 = vpop.eup %1575  ;;  %v665_v53 = vadd.f32 %v1928_v17, %v664_v50  ;;  %v1997_v50 = vld [vmem:[%s2159_s1 + $0x54] ss:$0 sm:$0xff] }
 0x1dc   :  { %v1578_v54 = vpop.eup %1577  ;;  %1496 = vmatprep.mubr.msk.f32.mxu0 %vm429_vm2, %v1576_v52 }
 0x1dd   :  { %1587 = vtanh.f32 %v665_v53  ;;  %v1460_v55 = vpop.f32.mrb[30].mxu1  ;;  %1497 = vmatmul.mubr.msk.f32.gmra.mrb[22].mxu0 %vm429_vm2, %v1578_v54 }
 0x1de   :  { %1589 = vtanh.f32 %v670_v49  ;;  %v680_v56 = vadd.f32 %v1460_v55, %v1928_v17  ;;  %v674_v57 = vpop.f32.mrb[31].mxu1 }
 0x1df   :  { %v1580_v58 = vpop.eup %1579  ;;  %v675_v51 = vadd.f32 %v1928_v17, %v674_v57 }
 0x1e0   :  { %v1582_v60 = vpop.eup %1581  ;;  %1499 = vmatprep.mubr.msk.f32.mxu0 %vm429_vm2, %v1580_v58 }
 0x1e1   :  { %1591 = vtanh.f32 %v675_v51  ;;  %v1463_v61 = vpop.f32.mrb[32].mxu1  ;;  %1500 = vmatmul.mubr.msk.f32.gmra.mrb[24].mxu0 %vm429_vm2, %v1582_v60 }
 0x1e2   :  { %1593 = vtanh.f32 %v680_v56  ;;  %v690_v62 = vadd.f32 %v1463_v61, %v1928_v17  ;;  %v684_v63 = vpop.f32.mrb[33].mxu1 }
 0x1e3   :  { %v1584_v0 = vpop.eup %1583  ;;  %v685_v59 = vadd.f32 %v1928_v17, %v684_v63 }
 0x1e4   :  { %v1586_v1 = vpop.eup %1585  ;;  %1502 = vmatprep.mubr.msk.f32.mxu0 %vm429_vm2, %v1584_v0 }
 0x1e5   :  { %1595 = vtanh.f32 %v685_v59  ;;  %v1466_v2 = vpop.f32.mrb[34].mxu1  ;;  %1503 = vmatmul.mubr.msk.f32.gmra.mrb[26].mxu0 %vm429_vm2, %v1586_v1 }
 0x1e6   :  { %1597 = vtanh.f32 %v690_v62  ;;  %v700_v4 = vadd.f32 %v1466_v2, %v1928_v17  ;;  %v694_v3 = vpop.f32.mrb[35].mxu1 }
 0x1e7   :  { %v1588_v5 = vpop.eup %1587  ;;  %v695_v6 = vadd.f32 %v1928_v17, %v694_v3 }
 0x1e8   :  { %v1590_v7 = vpop.eup %1589  ;;  %1505 = vmatprep.mubr.msk.f32.mxu0 %vm429_vm2, %v1588_v5 }
 0x1e9   :  { %1599 = vtanh.f32 %v695_v6  ;;  %v1469_v8 = vpop.f32.mrb[36].mxu1  ;;  %1506 = vmatmul.mubr.msk.f32.gmra.mrb[28].mxu0 %vm429_vm2, %v1590_v7 }
 0x1ea   :  { %1601 = vtanh.f32 %v700_v4  ;;  %v710_v9 = vadd.f32 %v1469_v8, %v1928_v17  ;;  %v704_v10 = vpop.f32.mrb[37].mxu1 }
 0x1eb   :  { %v1592_v11 = vpop.eup %1591  ;;  %v705_v12 = vadd.f32 %v1928_v17, %v704_v10 }
 0x1ec   :  { %v1594_v13 = vpop.eup %1593  ;;  %1508 = vmatprep.mubr.msk.f32.mxu0 %vm429_vm2, %v1592_v11 }
 0x1ed   :  { %1603 = vtanh.f32 %v705_v12  ;;  %v1472_v14 = vpop.f32.mrb[38].mxu1  ;;  %1509 = vmatmul.mubr.msk.f32.gmra.mrb[30].mxu0 %vm429_vm2, %v1594_v13 }
 0x1ee   :  { %1605 = vtanh.f32 %v710_v9  ;;  %v720_v15 = vadd.f32 %v1472_v14, %v1928_v17  ;;  %v714_v16 = vpop.f32.mrb[39].mxu1 }
 0x1ef   :  { %v1596_v18 = vpop.eup %1595  ;;  %v715_v19 = vadd.f32 %v1928_v17, %v714_v16 }
 0x1f0   :  { %v1598_v20 = vpop.eup %1597  ;;  %1511 = vmatprep.mubr.msk.f32.mxu0 %vm429_vm2, %v1596_v18 }
 0x1f1   :  { %1607 = vtanh.f32 %v715_v19  ;;  %v1475_v21 = vpop.f32.mrb[40].mxu1  ;;  %1512 = vmatmul.mubr.msk.f32.gmra.mrb[32].mxu0 %vm429_vm2, %v1598_v20 }
 0x1f2   :  { %1609 = vtanh.f32 %v720_v15  ;;  %v730_v47 = vadd.f32 %v1475_v21, %v1928_v17  ;;  %v724_v22 = vpop.f32.mrb[41].mxu1 }
 0x1f3   :  { %v1600_v23 = vpop.eup %1599  ;;  %v725_v24 = vadd.f32 %v1928_v17, %v724_v22 }
 0x1f4   :  { %v1602_v25 = vpop.eup %1601  ;;  %1514 = vmatprep.mubr.msk.f32.mxu0 %vm429_vm2, %v1600_v23 }
 0x1f5   :  { %1611 = vtanh.f32 %v725_v24  ;;  %v1478_v26 = vpop.f32.mrb[42].mxu1  ;;  %1515 = vmatmul.mubr.msk.f32.gmra.mrb[34].mxu0 %vm429_vm2, %v1602_v25 }
 0x1f6   :  { %1613 = vtanh.f32 %v730_v47  ;;  %v740_v27 = vadd.f32 %v1478_v26, %v1928_v17  ;;  %v734_v28 = vpop.f32.mrb[43].mxu1 }
 0x1f7   :  { %v1604_v29 = vpop.eup %1603  ;;  %v735_v30 = vadd.f32 %v1928_v17, %v734_v28 }
 0x1f8   :  { %v1606_v31 = vpop.eup %1605  ;;  %1517 = vmatprep.mubr.msk.f32.mxu0 %vm429_vm2, %v1604_v29 }
 0x1f9   :  { %1615 = vtanh.f32 %v735_v30  ;;  %v1481_v32 = vpop.f32.mrb[44].mxu1  ;;  %1518 = vmatmul.mubr.msk.f32.gmra.mrb[36].mxu0 %vm429_vm2, %v1606_v31 }
 0x1fa   :  { %1617 = vtanh.f32 %v740_v27  ;;  %v750_v33 = vadd.f32 %v1481_v32, %v1928_v17  ;;  %v744_v34 = vpop.f32.mrb[45].mxu1 }
 0x1fb   :  { %v1608_v35 = vpop.eup %1607  ;;  %v745_v36 = vadd.f32 %v1928_v17, %v744_v34 }
 0x1fc   :  { %v1610_v37 = vpop.eup %1609  ;;  %1520 = vmatprep.mubr.msk.f32.mxu0 %vm429_vm2, %v1608_v35 }
 0x1fd   :  { %1619 = vtanh.f32 %v745_v36  ;;  %v1484_v38 = vpop.f32.mrb[46].mxu1  ;;  %1521 = vmatmul.mubr.msk.f32.gmra.mrb[38].mxu0 %vm429_vm2, %v1610_v37 }
 0x1fe   :  { %1621 = vtanh.f32 %v750_v33  ;;  %v760_v39 = vadd.f32 %v1484_v38, %v1928_v17  ;;  %v754_v40 = vpop.f32.mrb[47].mxu1 }
 0x1ff   :  { %v1612_v41 = vpop.eup %1611  ;;  %v755_v42 = vadd.f32 %v1928_v17, %v754_v40 }
 0x200   :  { %v1614_v43 = vpop.eup %1613  ;;  %1523 = vmatprep.mubr.msk.f32.mxu0 %vm429_vm2, %v1612_v41 }
 0x201   :  { %1623 = vtanh.f32 %v755_v42  ;;  %1524 = vmatmul.mubr.msk.f32.gmra.mrb[40].mxu0 %vm429_vm2, %v1614_v43 }
 0x202   :  { %1625 = vtanh.f32 %v760_v39 }
 0x203   :  { %v1616_v44 = vpop.eup %1615 }
 0x204   :  { %v1618_v45 = vpop.eup %1617  ;;  %1526 = vmatprep.mubr.msk.f32.mxu0 %vm429_vm2, %v1616_v44 }
 0x205   :  { %1527 = vmatmul.mubr.msk.f32.gmra.mrb[42].mxu0 %vm429_vm2, %v1618_v45 }
 0x207   :  { %v1620_v46 = vpop.eup %1619 }
 0x208   :  { %v1622_v48 = vpop.eup %1621  ;;  %1529 = vmatprep.mubr.msk.f32.mxu0 %vm429_vm2, %v1620_v46 }
 0x209   :  { %1530 = vmatmul.mubr.msk.f32.gmra.mrb[44].mxu0 %vm429_vm2, %v1622_v48 }
 0x20b   :  { %v1624_v17 = vpop.eup %1623 }
 0x20c   :  { %v1626_v49 = vpop.eup %1625  ;;  %1532 = vmatprep.mubr.msk.f32.mxu0 %vm429_vm2, %v1624_v17 }
 0x20d   :  { %1533 = vmatmul.mubr.msk.f32.gmra.mrb[46].mxu0 %vm429_vm2, %v1626_v49 }
 0x2a4   :  { %v1489_v52 = vpop.f32.mrb[16].mxu0 }
 0x2a5   :  { %v970_v53 = vadd.f32 %v1489_v52, %v1997_v50  ;;  %v964_v54 = vpop.f32.mrb[17].mxu0 }
 0x2a6   :  { %v965_v55 = vadd.f32 %v1997_v50, %v964_v54 }
 0x2a7   :  { %1125 = vst.msk [vmem:[%s2161_s2 + $0x8] sm:$0xff] %vm1123_vm4, %v970_v53 }
 0x2a8   :  { %1124 = vst.msk [vmem:[%s2161_s2] sm:$0xff] %vm1123_vm4, %v965_v55  ;;  %v1492_v56 = vpop.f32.mrb[18].mxu0 }
 0x2a9   :  { %v980_v57 = vadd.f32 %v1492_v56, %v1997_v50  ;;  %v974_v58 = vpop.f32.mrb[19].mxu0 }
 0x2aa   :  { %v975_v51 = vadd.f32 %v1997_v50, %v974_v58 }
 0x2ab   :  { %1127 = vst.msk [vmem:[%s2161_s2 + $0x18] sm:$0xff] %vm1123_vm4, %v980_v57 }
 0x2ac   :  { %1126 = vst.msk [vmem:[%s2161_s2 + $0x10] sm:$0xff] %vm1123_vm4, %v975_v51  ;;  %v1495_v60 = vpop.f32.mrb[20].mxu0 }
 0x2ad   :  { %v990_v61 = vadd.f32 %v1495_v60, %v1997_v50  ;;  %v984_v62 = vpop.f32.mrb[21].mxu0 }
 0x2ae   :  { %v985_v63 = vadd.f32 %v1997_v50, %v984_v62 }
 0x2af   :  { %1129 = vst.msk [vmem:[%s2161_s2 + $0x28] sm:$0xff] %vm1123_vm4, %v990_v61 }
 0x2b0   :  { %1128 = vst.msk [vmem:[%s2161_s2 + $0x20] sm:$0xff] %vm1123_vm4, %v985_v63  ;;  %v1498_v0 = vpop.f32.mrb[22].mxu0 }
 0x2b1   :  { %v1000_v59 = vadd.f32 %v1498_v0, %v1997_v50  ;;  %v994_v1 = vpop.f32.mrb[23].mxu0 }
 0x2b2   :  { %v995_v2 = vadd.f32 %v1997_v50, %v994_v1 }
 0x2b3   :  { %1131 = vst.msk [vmem:[%s2161_s2 + $0x38] sm:$0xff] %vm1123_vm4, %v1000_v59 }
 0x2b4   :  { %1130 = vst.msk [vmem:[%s2161_s2 + $0x30] sm:$0xff] %vm1123_vm4, %v995_v2  ;;  %v1501_v4 = vpop.f32.mrb[24].mxu0 }
 0x2b5   :  { %v1010_v3 = vadd.f32 %v1501_v4, %v1997_v50  ;;  %v1004_v5 = vpop.f32.mrb[25].mxu0 }
 0x2b6   :  { %v1005_v6 = vadd.f32 %v1997_v50, %v1004_v5 }
 0x2b7   :  { %1133 = vst.msk [vmem:[%s2161_s2 + $0x48] sm:$0xff] %vm1123_vm4, %v1010_v3 }
 0x2b8   :  { %1132 = vst.msk [vmem:[%s2161_s2 + $0x40] sm:$0xff] %vm1123_vm4, %v1005_v6  ;;  %v1504_v7 = vpop.f32.mrb[26].mxu0 }
 0x2b9   :  { %v1020_v8 = vadd.f32 %v1504_v7, %v1997_v50  ;;  %v1014_v9 = vpop.f32.mrb[27].mxu0 }
 0x2ba   :  { %v1015_v10 = vadd.f32 %v1997_v50, %v1014_v9 }
 0x2bb   :  { %1135 = vst.msk [vmem:[%s2161_s2 + $0x58] sm:$0xff] %vm1123_vm4, %v1020_v8 }
 0x2bc   :  { %1134 = vst.msk [vmem:[%s2161_s2 + $0x50] sm:$0xff] %vm1123_vm4, %v1015_v10  ;;  %v1507_v11 = vpop.f32.mrb[28].mxu0 }
 0x2bd   :  { %v1030_v12 = vadd.f32 %v1507_v11, %v1997_v50  ;;  %v1024_v13 = vpop.f32.mrb[29].mxu0 }
 0x2be   :  { %v1025_v14 = vadd.f32 %v1997_v50, %v1024_v13 }
 0x2bf   :  { %1137 = vst.msk [vmem:[%s2161_s2 + $0x68] sm:$0xff] %vm1123_vm4, %v1030_v12 }
 0x2c0   :  { %1136 = vst.msk [vmem:[%s2161_s2 + $0x60] sm:$0xff] %vm1123_vm4, %v1025_v14  ;;  %v1510_v15 = vpop.f32.mrb[30].mxu0 }
 0x2c1   :  { %v1040_v16 = vadd.f32 %v1510_v15, %v1997_v50  ;;  %v1034_v18 = vpop.f32.mrb[31].mxu0 }
 0x2c2   :  { %v1035_v19 = vadd.f32 %v1997_v50, %v1034_v18 }
 0x2c3   :  { %1139 = vst.msk [vmem:[%s2161_s2 + $0x78] sm:$0xff] %vm1123_vm4, %v1040_v16 }
 0x2c4   :  { %1138 = vst.msk [vmem:[%s2161_s2 + $0x70] sm:$0xff] %vm1123_vm4, %v1035_v19  ;;  %v1513_v20 = vpop.f32.mrb[32].mxu0 }
 0x2c5   :  { %v1050_v21 = vadd.f32 %v1513_v20, %v1997_v50  ;;  %v1044_v47 = vpop.f32.mrb[33].mxu0 }
 0x2c6   :  { %v1045_v22 = vadd.f32 %v1997_v50, %v1044_v47 }
 0x2c7   :  { %1141 = vst.msk [vmem:[%s2161_s2 + $0x88] sm:$0xff] %vm1123_vm4, %v1050_v21 }
 0x2c8   :  { %1140 = vst.msk [vmem:[%s2161_s2 + $0x80] sm:$0xff] %vm1123_vm4, %v1045_v22  ;;  %v1516_v23 = vpop.f32.mrb[34].mxu0 }
 0x2c9   :  { %v1060_v24 = vadd.f32 %v1516_v23, %v1997_v50  ;;  %v1054_v25 = vpop.f32.mrb[35].mxu0 }
 0x2ca   :  { %v1055_v26 = vadd.f32 %v1997_v50, %v1054_v25 }
 0x2cb   :  { %1143 = vst.msk [vmem:[%s2161_s2 + $0x98] sm:$0xff] %vm1123_vm4, %v1060_v24 }
 0x2cc   :  { %1142 = vst.msk [vmem:[%s2161_s2 + $0x90] sm:$0xff] %vm1123_vm4, %v1055_v26  ;;  %v1519_v27 = vpop.f32.mrb[36].mxu0 }
 0x2cd   :  { %v1070_v28 = vadd.f32 %v1519_v27, %v1997_v50  ;;  %v1064_v29 = vpop.f32.mrb[37].mxu0 }
 0x2ce   :  { %v1065_v30 = vadd.f32 %v1997_v50, %v1064_v29 }
 0x2cf   :  { %1145 = vst.msk [vmem:[%s2161_s2 + $0xa8] sm:$0xff] %vm1123_vm4, %v1070_v28 }
 0x2d0   :  { %1144 = vst.msk [vmem:[%s2161_s2 + $0xa0] sm:$0xff] %vm1123_vm4, %v1065_v30  ;;  %v1522_v31 = vpop.f32.mrb[38].mxu0 }
 0x2d1   :  { %v1080_v32 = vadd.f32 %v1522_v31, %v1997_v50  ;;  %v1074_v33 = vpop.f32.mrb[39].mxu0 }
 0x2d2   :  { %v1075_v34 = vadd.f32 %v1997_v50, %v1074_v33 }
 0x2d3   :  { %1147 = vst.msk [vmem:[%s2161_s2 + $0xb8] sm:$0xff] %vm1123_vm4, %v1080_v32 }
 0x2d4   :  { %1146 = vst.msk [vmem:[%s2161_s2 + $0xb0] sm:$0xff] %vm1123_vm4, %v1075_v34  ;;  %v1525_v35 = vpop.f32.mrb[40].mxu0 }
 0x2d5   :  { %v1090_v36 = vadd.f32 %v1525_v35, %v1997_v50  ;;  %v1084_v37 = vpop.f32.mrb[41].mxu0 }
 0x2d6   :  { %v1085_v38 = vadd.f32 %v1997_v50, %v1084_v37 }
 0x2d7   :  { %1149 = vst.msk [vmem:[%s2161_s2 + $0xc8] sm:$0xff] %vm1123_vm4, %v1090_v36 }
 0x2d8   :  { %1148 = vst.msk [vmem:[%s2161_s2 + $0xc0] sm:$0xff] %vm1123_vm4, %v1085_v38  ;;  %v1528_v39 = vpop.f32.mrb[42].mxu0 }
 0x2d9   :  { %v1100_v40 = vadd.f32 %v1528_v39, %v1997_v50  ;;  %v1094_v41 = vpop.f32.mrb[43].mxu0 }
 0x2da   :  { %v1095_v42 = vadd.f32 %v1997_v50, %v1094_v41 }
 0x2db   :  { %1151 = vst.msk [vmem:[%s2161_s2 + $0xd8] sm:$0xff] %vm1123_vm4, %v1100_v40 }
 0x2dc   :  { %1150 = vst.msk [vmem:[%s2161_s2 + $0xd0] sm:$0xff] %vm1123_vm4, %v1095_v42  ;;  %v1531_v43 = vpop.f32.mrb[44].mxu0 }
 0x2dd   :  { %v1110_v44 = vadd.f32 %v1531_v43, %v1997_v50  ;;  %v1104_v45 = vpop.f32.mrb[45].mxu0 }
 0x2de   :  { %v1105_v46 = vadd.f32 %v1997_v50, %v1104_v45 }
 0x2df   :  { %1153 = vst.msk [vmem:[%s2161_s2 + $0xe8] sm:$0xff] %vm1123_vm4, %v1110_v44 }
 0x2e0   :  { %1152 = vst.msk [vmem:[%s2161_s2 + $0xe0] sm:$0xff] %vm1123_vm4, %v1105_v46  ;;  %v1534_v48 = vpop.f32.mrb[46].mxu0 }
 0x2e1   :  { %v1120_v17 = vadd.f32 %v1534_v48, %v1997_v50  ;;  %v1114_v49 = vpop.f32.mrb[47].mxu0 }
 0x2e2   :  { %v1115_v52 = vadd.f32 %v1997_v50, %v1114_v49 }
 0x2e3   :  { %1155 = vst.msk [vmem:[%s2161_s2 + $0xf8] sm:$0xff] %vm1123_vm4, %v1120_v17 }
 0x2e4   :  { %1154 = vst.msk [vmem:[%s2161_s2 + $0xf0] sm:$0xff] %vm1123_vm4, %v1115_v52 }

</bundles_post_ra>
